<compile_context>
chip_gen: v5e
topology: v5e:2x2
jax: 0.10.0
libtpu: 0.0.40
codegen_flags: <defaults>
</compile_context>

<pallas_src>
import jax
import jax.numpy as jnp
from jax.experimental import pallas as pl
from jax.experimental.pallas import tpu as pltpu


def _epsilon_net_kernel(coef_ref, x_ref, w1_ref, bias1_ref, w2_ref, b2_ref,
                        eps_ref, x0_ref, score_ref):
    """Fused net-forward + predict_x0 + score for one batch tile.

    coef_ref (SMEM, (3,)): [sqrt(1-acp), rsqrt(acp), rsqrt(1-acp)]
    eps   = relu(x @ W1 + (b1 + temb)) @ W2 + b2      (bf16 MXU, f32 accumulate)
    x0    = (x - sqrt(1-acp) * eps) * rsqrt(acp)       (f32 VPU)
    score = -eps * rsqrt(1-acp)                        (f32 VPU, fused)
    """
    # bf16 operand for the MXU (no f32 copy kept live across the matmuls).
    x_bf = x_ref[...].astype(jnp.bfloat16)

    # hidden = relu(x @ W1 + bias1)   (bias1 already has the time embedding folded in)
    h = jnp.dot(x_bf, w1_ref[...], preferred_element_type=jnp.float32)
    h = jnp.maximum(h + bias1_ref[...], 0.0)

    # eps = h @ W2 + b2
    eps = jnp.dot(h.astype(jnp.bfloat16), w2_ref[...],
                  preferred_element_type=jnp.float32) + b2_ref[...]
    eps_ref[...] = eps

    # Re-read x from VMEM right before the x0 math (cheap reload, keeps vreg
    # live ranges short when the batch tile is large).
    x_f32 = x_ref[...].astype(jnp.float32)
    x0_ref[...] = (x_f32 - coef_ref[0] * eps) * coef_ref[1]
    score_ref[...] = -eps * coef_ref[2]


def _choose_tile_b(B):
    """Largest batch tile that divides B, is a multiple of 8, and is <= 512.

    If the whole batch fits in a single tile, split it in two (when the halves
    stay sublane-aligned) so the two TensorCores on v7x each get a grid step;
    on 1-TC chips this costs only one extra ~0.35 us grid step.
    """
    cap = 512
    if B <= cap:
        if B % 2 == 0 and (B // 2) % 8 == 0:
            return B // 2
        return B
    for tb in range(cap, 7, -8):
        if B % tb == 0:
            return tb
    for tb in range(cap, 0, -1):          # last-resort divisor (perf cliff only)
        if B % tb == 0:
            return tb
    return B


def _fused_eps_x0_score_impl(x, t, w1_bf16, b1_f32, w2_bf16, b2_f32,
                             alphas_cumprod, acp0, freqs):
    """Single jitted path: temb + acp gather + coef + one pallas_call."""
    B, D = x.shape
    H = w1_bf16.shape[1]

    # alpha_cum_t = alphas_cumprod[t] / alphas_cumprod[timesteps[0]]
    acp = alphas_cumprod[t] / acp0

    # sinusoidal time embedding, folded into the first-layer bias (freqs hoisted)
    ang = t.astype(jnp.float32) * freqs
    temb = jnp.concatenate([jnp.sin(ang), jnp.cos(ang)])[None, :]      # (1, H)
    bias1 = b1_f32 + temb                                              # (1, H)

    coef = jnp.stack([jnp.sqrt(1.0 - acp),
                      jax.lax.rsqrt(acp),
                      jax.lax.rsqrt(1.0 - acp)]).astype(jnp.float32)   # (3,) SMEM

    tile_b = _choose_tile_b(B)
    grid = (pl.cdiv(B, tile_b),)

    # Explicit VMEM budget: resident bf16 weights + biases, plus double-buffered
    # x tile and the three f32 output tiles. Clamped to v7x's 64 MiB physical.
    # TODO(synk): for very large D/H the resident-weight scheme stops fitting on
    # v7x; that regime needs an H-tiled reduction grid axis with a VMEM accumulator.
    weight_bytes = 2 * D * H * 2 + (H + D) * 4
    tile_io_bytes = tile_b * D * 4 * 4 * 2
    vmem_limit = int(min(max(2 * (weight_bytes + tile_io_bytes), 32 << 20),
                         64 << 20))

    eps, x0, score = pl.pallas_call(
        _epsilon_net_kernel,
        out_shape=(
            jax.ShapeDtypeStruct((B, D), jnp.float32),
            jax.ShapeDtypeStruct((B, D), jnp.float32),
            jax.ShapeDtypeStruct((B, D), jnp.float32),
        ),
        grid=grid,
        in_specs=[
            pl.BlockSpec(memory_space=pltpu.MemorySpace.SMEM),         # coef scalars
            pl.BlockSpec((tile_b, D), lambda i: (i, 0)),               # x tile
            pl.BlockSpec((D, H), lambda i: (0, 0)),                    # W1 (resident)
            pl.BlockSpec((1, H), lambda i: (0, 0)),                    # b1 + temb (resident)
            pl.BlockSpec((H, D), lambda i: (0, 0)),                    # W2 (resident)
            pl.BlockSpec((1, D), lambda i: (0, 0)),                    # b2 (resident)
        ],
        out_specs=(
            pl.BlockSpec((tile_b, D), lambda i: (i, 0)),               # eps
            pl.BlockSpec((tile_b, D), lambda i: (i, 0)),               # x0
            pl.BlockSpec((tile_b, D), lambda i: (i, 0)),               # score
        ),
        compiler_params=pltpu.CompilerParams(
            dimension_semantics=("parallel",),                         # v7x: 2 TCs
            vmem_limit_bytes=vmem_limit),
    )(coef, x, w1_bf16, bias1, w2_bf16, b2_f32)

    return eps, x0, score


_fused_eps_x0_score = jax.jit(_fused_eps_x0_score_impl)


class EpsilonNet:
    """JAX/Pallas port of the PyTorch EpsilonNet wrapper (synthetic MLP net)."""

    def __init__(self, params, alphas_cumprod, timesteps):
        # params = (W1 (D,H), b1 (1,H), W2 (H,D), b2 (1,D))
        W1, b1, W2, b2 = params
        self.W1 = jnp.asarray(W1, jnp.bfloat16)       # bf16 weights for the MXU
        self.W2 = jnp.asarray(W2, jnp.bfloat16)
        self.b1 = jnp.asarray(b1, jnp.float32)
        self.b2 = jnp.asarray(b2, jnp.float32)
        self.alphas_cumprod = jnp.asarray(alphas_cumprod, jnp.float32)
        self.timesteps = jnp.asarray(timesteps, jnp.int32)
        # constants hoisted out of the per-step path
        self.acp0 = self.alphas_cumprod[self.timesteps[0]]
        H = self.W1.shape[1]
        half = H // 2
        self.freqs = jnp.exp(
            -jnp.log(10000.0) * jnp.arange(half, dtype=jnp.float32) / float(half))

    # combined method: one fused kernel launch returns everything a sampler needs
    def eps_x0_score(self, x, t):
        t_dev = jnp.asarray(t, jnp.int32)
        return _fused_eps_x0_score(x, t_dev, self.W1, self.b1, self.W2, self.b2,
                                   self.alphas_cumprod, self.acp0, self.freqs)

    # forward(x, t) = net(x, t)
    def forward(self, x, t):
        return self.eps_x0_score(x, t)[0]

    # predict_x0(x, t) = (x - sqrt(1-acp_t) * eps) / sqrt(acp_t)
    def predict_x0(self, x, t):
        return self.eps_x0_score(x, t)[1]

    # score(x, t) = -eps / sqrt(1 - acp_t)
    def score(self, x, t):
        return self.eps_x0_score(x, t)[2]

    # TODO(synk): value_and_grad_predx0 / value_and_jac_predx0 need a custom VJP
    # through pallas_call; not implemented here.


def _reference(x, t, W1, b1, W2, b2, alphas_cumprod, t0):
    """Pure-JAX reference (same bf16 matmul path) for correctness check."""
    H = W1.shape[1]
    half = H // 2
    freqs = jnp.exp(-jnp.log(10000.0) * jnp.arange(half, dtype=jnp.float32) / float(half))
    ang = jnp.float32(t) * freqs
    temb = jnp.concatenate([jnp.sin(ang), jnp.cos(ang)])[None, :]
    h = jnp.dot(x.astype(jnp.bfloat16), W1.astype(jnp.bfloat16),
                preferred_element_type=jnp.float32)
    h = jnp.maximum(h + b1 + temb, 0.0)
    eps = jnp.dot(h.astype(jnp.bfloat16), W2.astype(jnp.bfloat16),
                  preferred_element_type=jnp.float32) + b2
    acp = alphas_cumprod[t] / alphas_cumprod[t0]
    x0 = (x - jnp.sqrt(1.0 - acp) * eps) / jnp.sqrt(acp)
    score = -eps / jnp.sqrt(1.0 - acp)
    return eps, x0, score


if __name__ == "__main__":
    # Lane/MXU-friendly small shapes: B mult of 16, D/H mult of 128.
    B, D, H = 32, 128, 256
    T = 50

    key = jax.random.PRNGKey(0)
    k_x, k_w1, k_b1, k_w2, k_b2 = jax.random.split(key, 5)

    x = jax.random.normal(k_x, (B, D), dtype=jnp.float32)
    W1 = jax.random.normal(k_w1, (D, H), dtype=jnp.float32) * 0.1
    b1 = jax.random.normal(k_b1, (1, H), dtype=jnp.float32) * 0.1
    W2 = jax.random.normal(k_w2, (H, D), dtype=jnp.float32) * 0.1
    b2 = jax.random.normal(k_b2, (1, D), dtype=jnp.float32) * 0.1
    params = (W1, b1, W2, b2)

    # deterministic diffusion schedule
    betas = jnp.linspace(1e-4, 0.02, T, dtype=jnp.float32)
    alphas_cumprod = jnp.cumprod(1.0 - betas)
    timesteps = jnp.arange(0, T, 5, dtype=jnp.int32)

    net = EpsilonNet(params, alphas_cumprod, timesteps)

    t = 10
    eps, x0, sc = net.eps_x0_score(x, t)      # one fused kernel launch
    jax.block_until_ready((eps, x0, sc))

    eps_ref, x0_ref, sc_ref = _reference(x, t, W1, b1, W2, b2,
                                         alphas_cumprod, int(timesteps[0]))
    assert jnp.allclose(eps, eps_ref, atol=5e-3, rtol=5e-3)
    assert jnp.allclose(x0, x0_ref, atol=5e-3, rtol=5e-3)
    assert jnp.allclose(sc, sc_ref, atol=5e-2, rtol=5e-3)

    # individual methods route through the same jitted fused call
    assert jnp.allclose(net.forward(x, t), eps_ref, atol=5e-3, rtol=5e-3)
    assert jnp.allclose(net.predict_x0(x, t), x0_ref, atol=5e-3, rtol=5e-3)
    assert jnp.allclose(net.score(x, t), sc_ref, atol=5e-2, rtol=5e-3)

    print("KERNEL_OK")
</pallas_src>

<mosaic_0001>
module attributes {stable_mosaic.version = 11 : i64} {
  func.func @_epsilon_net_kernel(%arg0: i32, %arg1: memref<3xf32, #tpu.memory_space<smem>>, %arg2: memref<16x128xf32, #tpu.memory_space<vmem>>, %arg3: memref<128x256xbf16, #tpu.memory_space<vmem>>, %arg4: memref<1x256xf32, #tpu.memory_space<vmem>>, %arg5: memref<256x128xbf16, #tpu.memory_space<vmem>>, %arg6: memref<1x128xf32, #tpu.memory_space<vmem>>, %arg7: memref<16x128xf32, #tpu.memory_space<vmem>>, %arg8: memref<16x128xf32, #tpu.memory_space<vmem>>, %arg9: memref<16x128xf32, #tpu.memory_space<vmem>>) attributes {dimension_semantics = [#tpu.dimension_semantics<parallel>], iteration_bounds = array<i64: 2>, scalar_prefetch = 0 : i64, scratch_operands = 0 : i64, tpu.core_type = #tpu.core_type<tc>, window_params = [{transform_indices = @transform_0, window_bounds = array<i64: 3>}, {transform_indices = @transform_1, window_bounds = array<i64: 16, 128>}, {pipeline_mode = #tpu.pipeline_mode<synchronous>, transform_indices = @transform_2, window_bounds = array<i64: 128, 256>}, {pipeline_mode = #tpu.pipeline_mode<synchronous>, transform_indices = @transform_3, window_bounds = array<i64: 1, 256>}, {pipeline_mode = #tpu.pipeline_mode<synchronous>, transform_indices = @transform_4, window_bounds = array<i64: 256, 128>}, {pipeline_mode = #tpu.pipeline_mode<synchronous>, transform_indices = @transform_5, window_bounds = array<i64: 1, 128>}, {transform_indices = @transform_6, window_bounds = array<i64: 16, 128>}, {transform_indices = @transform_7, window_bounds = array<i64: 16, 128>}, {transform_indices = @transform_8, window_bounds = array<i64: 16, 128>}]} {
    %c0 = arith.constant 0 : index
    %c0_0 = arith.constant 0 : index
    %0 = vector.load %arg2[%c0, %c0_0] : memref<16x128xf32, #tpu.memory_space<vmem>>, vector<16x128xf32>
    %1 = arith.truncf %0 : vector<16x128xf32> to vector<16x128xbf16>
    %c0_1 = arith.constant 0 : index
    %c0_2 = arith.constant 0 : index
    %2 = vector.load %arg3[%c0_1, %c0_2] : memref<128x256xbf16, #tpu.memory_space<vmem>>, vector<128x256xbf16>
    %cst = arith.constant dense<0.000000e+00> : vector<16x256xf32>
    %3 = tpu.matmul %1, %2, %cst {dimension_numbers = #tpu.dot_dimension_numbers<[1], [0], [0], [1], [0, 0, 1, 1], [], []>} : vector<16x128xbf16>, vector<128x256xbf16>, vector<16x256xf32> -> vector<16x256xf32>
    %c0_3 = arith.constant 0 : index
    %c0_4 = arith.constant 0 : index
    %4 = vector.load %arg4[%c0_3, %c0_4] : memref<1x256xf32, #tpu.memory_space<vmem>>, vector<1x256xf32>
    %5 = vector.broadcast %4 : vector<1x256xf32> to vector<16x256xf32>
    %6 = arith.addf %3, %5 : vector<16x256xf32>
    %cst_5 = arith.constant 0.000000e+00 : f32
    %7 = vector.broadcast %cst_5 : f32 to vector<16x256xf32>
    %8 = arith.maximumf %6, %7 : vector<16x256xf32>
    %9 = arith.truncf %8 : vector<16x256xf32> to vector<16x256xbf16>
    %c0_6 = arith.constant 0 : index
    %c0_7 = arith.constant 0 : index
    %10 = vector.load %arg5[%c0_6, %c0_7] : memref<256x128xbf16, #tpu.memory_space<vmem>>, vector<256x128xbf16>
    %cst_8 = arith.constant dense<0.000000e+00> : vector<16x128xf32>
    %11 = tpu.matmul %9, %10, %cst_8 {dimension_numbers = #tpu.dot_dimension_numbers<[1], [0], [0], [1], [0, 0, 1, 1], [], []>} : vector<16x256xbf16>, vector<256x128xbf16>, vector<16x128xf32> -> vector<16x128xf32>
    %c0_9 = arith.constant 0 : index
    %c0_10 = arith.constant 0 : index
    %12 = vector.load %arg6[%c0_9, %c0_10] : memref<1x128xf32, #tpu.memory_space<vmem>>, vector<1x128xf32>
    %13 = vector.broadcast %12 : vector<1x128xf32> to vector<16x128xf32>
    %14 = arith.addf %11, %13 : vector<16x128xf32>
    %c0_11 = arith.constant 0 : index
    %c0_12 = arith.constant 0 : index
    %15 = vector.load %arg7[%c0_11, %c0_12] : memref<16x128xf32, #tpu.memory_space<vmem>>, vector<16x128xf32>
    tpu.vector_store %arg7[%c0_11, %c0_12], %14 {strides = array<i32>} : memref<16x128xf32, #tpu.memory_space<vmem>>, vector<16x128xf32>,
    %c0_13 = arith.constant 0 : index
    %c0_14 = arith.constant 0 : index
    %16 = vector.load %arg2[%c0_13, %c0_14] : memref<16x128xf32, #tpu.memory_space<vmem>>, vector<16x128xf32>
    %c0_15 = arith.constant 0 : index
    %17 = memref.load %arg1[%c0_15] : memref<3xf32, #tpu.memory_space<smem>>
    %18 = vector.broadcast %17 : f32 to vector<16x128xf32>
    %19 = arith.mulf %18, %14 : vector<16x128xf32>
    %20 = arith.subf %16, %19 : vector<16x128xf32>
    %c1 = arith.constant 1 : index
    %21 = memref.load %arg1[%c1] : memref<3xf32, #tpu.memory_space<smem>>
    %22 = vector.broadcast %21 : f32 to vector<16x128xf32>
    %23 = arith.mulf %20, %22 : vector<16x128xf32>
    %c0_16 = arith.constant 0 : index
    %c0_17 = arith.constant 0 : index
    %24 = vector.load %arg8[%c0_16, %c0_17] : memref<16x128xf32, #tpu.memory_space<vmem>>, vector<16x128xf32>
    tpu.vector_store %arg8[%c0_16, %c0_17], %23 {strides = array<i32>} : memref<16x128xf32, #tpu.memory_space<vmem>>, vector<16x128xf32>,
    %cst_18 = arith.constant 0.000000e+00 : f32
    %25 = vector.broadcast %cst_18 : f32 to vector<16x128xf32>
    %26 = arith.subf %25, %14 : vector<16x128xf32>
    %c2 = arith.constant 2 : index
    %27 = memref.load %arg1[%c2] : memref<3xf32, #tpu.memory_space<smem>>
    %28 = vector.broadcast %27 : f32 to vector<16x128xf32>
    %29 = arith.mulf %26, %28 : vector<16x128xf32>
    %c0_19 = arith.constant 0 : index
    %c0_20 = arith.constant 0 : index
    %30 = vector.load %arg9[%c0_19, %c0_20] : memref<16x128xf32, #tpu.memory_space<vmem>>, vector<16x128xf32>
    tpu.vector_store %arg9[%c0_19, %c0_20], %29 {strides = array<i32>} : memref<16x128xf32, #tpu.memory_space<vmem>>, vector<16x128xf32>,
    return
  }
  func.func @transform_0(%arg0: i32) -> i32 {
    %c0_i32 = arith.constant 0 : i32
    %c0_i32_0 = arith.constant 0 : i32
    return %c0_i32 : i32
  }
  func.func @transform_1(%arg0: i32) -> (i32, i32) {
    %c0_i32 = arith.constant 0 : i32
    %c0_i32_0 = arith.constant 0 : i32
    return %arg0, %c0_i32 : i32, i32
  }
  func.func @transform_2(%arg0: i32) -> (i32, i32) {
    %c0_i32 = arith.constant 0 : i32
    %c0_i32_0 = arith.constant 0 : i32
    %c0_i32_1 = arith.constant 0 : i32
    return %c0_i32, %c0_i32_0 : i32, i32
  }
  func.func @transform_3(%arg0: i32) -> (i32, i32) {
    %c0_i32 = arith.constant 0 : i32
    %c0_i32_0 = arith.constant 0 : i32
    %c0_i32_1 = arith.constant 0 : i32
    return %c0_i32, %c0_i32_0 : i32, i32
  }
  func.func @transform_4(%arg0: i32) -> (i32, i32) {
    %c0_i32 = arith.constant 0 : i32
    %c0_i32_0 = arith.constant 0 : i32
    %c0_i32_1 = arith.constant 0 : i32
    return %c0_i32, %c0_i32_0 : i32, i32
  }
  func.func @transform_5(%arg0: i32) -> (i32, i32) {
    %c0_i32 = arith.constant 0 : i32
    %c0_i32_0 = arith.constant 0 : i32
    %c0_i32_1 = arith.constant 0 : i32
    return %c0_i32, %c0_i32_0 : i32, i32
  }
  func.func @transform_6(%arg0: i32) -> (i32, i32) {
    %c0_i32 = arith.constant 0 : i32
    %c0_i32_0 = arith.constant 0 : i32
    return %arg0, %c0_i32 : i32, i32
  }
  func.func @transform_7(%arg0: i32) -> (i32, i32) {
    %c0_i32 = arith.constant 0 : i32
    %c0_i32_0 = arith.constant 0 : i32
    return %arg0, %c0_i32 : i32, i32
  }
  func.func @transform_8(%arg0: i32) -> (i32, i32) {
    %c0_i32 = arith.constant 0 : i32
    %c0_i32_0 = arith.constant 0 : i32
    return %arg0, %c0_i32 : i32, i32
  }
}

</mosaic_0001>

<bundles_post_ra>
// kernel: _fused_eps_x0_score_impl.1
= control target key start
LH: loop header
LB: loop body
LE: loop exit
PB: predicated region body
PF: predicated region fallthrough
CT: control target
= control target key end

     0   :  { %s1805_s0 = inlined_call_operand.vmem [shape: f32[3], index: 0, kind: input, shape index: {}]   ;;  %s1806_s1 = inlined_call_operand.hbm [shape: f32[32,128], index: 1, kind: input, shape index: {}]   ;;  %s1807_s2 = inlined_call_operand.hbm [shape: bf16[128,256], index: 2, kind: input, shape index: {}]   ;;  %s1808_s3 = inlined_call_operand.vmem [shape: f32[1,256], index: 3, kind: input, shape index: {}]   ;;  %s1809_s4 = inlined_call_operand.hbm [shape: bf16[256,128], index: 4, kind: input, shape index: {}]   ;;  %s1810_s5 = inlined_call_operand.vmem [shape: f32[1,128], index: 5, kind: input, shape index: {}]   ;;  %s1811_s6 = inlined_call_operand.hbm [shape: f32[32,128], index: 6, kind: output, shape index: {0}]   ;;  %s1812_s7 = inlined_call_operand.hbm [shape: f32[32,128], index: 7, kind: output, shape index: {1}]   ;;  %s1813_s8 = inlined_call_operand.hbm [shape: f32[32,128], index: 8, kind: output, shape index: {2}]  }
   0x1   :  { %1817 = sst [smem:[#allocation19_spill]] %s1805_s0 }
   0x2   :  { %1818 = sst [smem:[#allocation20_spill]] %s1806_s1 }
   0x3   :  { %1819 = sst [smem:[#allocation21_spill]] %s1807_s2 }
   0x4   :  { %1820 = sst [smem:[#allocation22_spill]] %s1808_s3 }
   0x5   :  { %1821 = sst [smem:[#allocation23_spill]] %s1809_s4 }
   0x6   :  { %1822 = sst [smem:[#allocation24_spill]] %s1810_s5 }
   0x7   :  { %14 = vsyncpa [#allocation5], 0 }
   0x8   :  { %15 = vsyncpa [#allocation3], 0 }
   0x9   :  { %17 = vsyncpa [#allocation3 + $0x1], 0 }
   0xa   :  { %18 = vsyncpa [#allocation8], 0 }
   0xb   :  { %19 = vsyncpa [#allocation4], 0 }
   0xc   :  { %21 = vsyncpa [#allocation4 + $0x1], 0 }
   0xd   :  { %22 = vsyncpa [#allocation12], 0 }
   0xe   :  { %24 = vsyncpa [#allocation12 + $0x1], 0  ;;  %s1528_s27 = smov 0   ;;  %s1530_s28 = smov 0  }
   0xf   :  { %s1532_s29 = smov 0   ;;  %s1534_s30 = smov 0  }
  0x10 LB: > { %s1549_s9 = sadd.s32 4294967295, %s1472_s30   ;;  %s1814_s10 = sadd.s32 4294967294, %s1472_s30   ;;  %s1472_s30 = sphi %s1534_s30, %s1843_s30   ;;  %s1468_s29 = sphi %s1532_s29, %s1842_s29   ;;  %s1464_s28 = sphi %s1530_s28, %s1841_s28   ;;  %s1460_s27 = sphi %s1528_s27, %s1840_s27  }
  0x11   : > { %p71_p0 = scmp.ne.s32.totalorder %s1464_s28, %s1460_s27  ;;  %p72_p1 = scmp.eq.s32.totalorder %s1549_s9, 0 }
  0x12   : > { %p179_p2 = scmp.eq.s32.totalorder %s1549_s9, 1  ;;  %p185_p3 = scmp.eq.s32.totalorder %s1814_s10, 1 }
  0x13   : > { %p1560_p4 = por %p72_p1, %p71_p0  ;;  %p946_p5 = scmp.ge.s32.totalorder %s1472_s30, 1 }
  0x14   : > { %p1565_p6 = por %p185_p3, %p71_p0  ;;  %p244_p7 = scmp.lt.s32.totalorder %s1472_s30, 3 }
  0x15   : > { %s1825_s2 = sld [smem:[#allocation21_spill]]  ;;  %s1474_s17 = smov [#allocation7]  }
  0x16   : > { %p1573_p8 = pnand %p946_p5, %p244_p7  ;;  %s267_s18 = sshll.u32 %s1474_s17, 4  ;;  %s268_s18 = int_to_ptr.vmem [resolvable:$true] %s267_s18 }
  0x17   : > { %s1828_s0 = sld [smem:[#allocation19_spill]]  ;;  %s1815_s23 = smov 128  }
  0x18   : > { %p1159_p9 = pneg %p1573_p8  ;;  %s1816_s24 = smov 8  }
  0x19   : > { %s1477_s25 = smov [#allocation2]   ;;  %s1829_s4 = sld [smem:[#allocation23_spill]] }
  0x1a   : > { %p1581_p10 = pnand %p1159_p9, %p72_p1  ;;  %s1478_s17 = smov [#allocation9]  }
  0x1b   : > { %s265_s15 = sshll.u32 %s1825_s2, 4  ;;  %s284_s20 = sshll.u32 %s1478_s17, 4  ;;  %s266_s15 = int_to_ptr.hbm [resolvable:$true] %s265_s15  ;;  %s285_s20 = int_to_ptr.vmem [resolvable:$true] %s284_s20 }
  0x1c   : > { %1165 = dma.hbm_to_vmem [thread:$0]  (!%p1581_p10), %s266_s15, 2048, %s268_s18, [#allocation8], %s1815_s23, %s1815_s23, %s1816_s24  }
  0x1d   : > { %s256_s22 = sshll.u32 %s1828_s0, 4  ;;  %s1479_s21 = smov 64   ;;  %s257_s22 = int_to_ptr.vmem [resolvable:$true] %s256_s22 }
  0x1e   : > { %1162 = dma.vmem_to_smem (!%p1581_p10), %s257_s22, 16, %s1477_s25, [#allocation5]  }
  0x1f   : > { %s282_s14 = sshll.u32 %s1829_s4, 4  ;;  %s1480_s10 = smov 4   ;;  %s283_s14 = int_to_ptr.hbm [resolvable:$true] %s282_s14 }
  0x20   : > { %1168 = dma.hbm_to_vmem [thread:$0]  (!%p1581_p10), %s283_s14, 2048, %s285_s20, [#allocation8], %s1479_s21, %s1479_s21, %s1480_s10  }
  0x21   : > { %s1602_s15 = sadd.s32 1, %s1472_s30   ;;  %s58_s22 = sadd.s32 1, %s1468_s29 }
  0x22   : > { %s55_s18 = ssub.s32 %s1472_s30, %s1602_s15  ;;  %p65_p13 = scmp.ne.s32.totalorder %s1468_s29, %s1464_s28 }
  0x23   : > { %p56_p12 = scmp.eq.s32.totalorder %s55_s18, 0  ;;  %p66_p0 = scmp.eq.s32.totalorder %s1472_s30, 0 }
  0x24   : > { %p1615_p3 = por %p179_p2, %p65_p13  ;;  %p1186_p5 = scmp.lt.s32.totalorder %s1472_s30, 2 }
  0x25   : > { %s1611_s25 = scalar_select %p56_p12, %s1468_s29, %s58_s22  }
  0x26   : > { %s301_s13 = sand.u32 1, %s1468_s29   ;;  %s1103_s17 = sshll.u32 %s1472_s30, 4 }
  0x27   : > { %p67_p7 = por %p66_p0, %p65_p13  ;;  %s951_s10 = sshll.u32 %s301_s13, 4 }
  0x28   : > { %s1831_s1 = sld [smem:[#allocation20_spill]]  ;;  %s305_s18 = scalar_lea.vmem [#allocation6], %s951_s10 }
  0x29   : > { %s313_s23 = sshll.u32 %s305_s18, 4  ;;  %p1625_p9 = pnand %p1186_p5, %p67_p7  ;;  %s314_s23 = int_to_ptr.vmem [resolvable:$true] %s313_s23 }
  0x2a   : > { %s302_s24 = scalar_lea.sflag [#allocation3], %s301_s13 }
  0x2b   : > { %p1312_p10 = pneg %p1625_p9 }
  0x2e   : > { %s310_s20 = scalar_lea.hbm %s1831_s1, %s1103_s17  ;;  %s1315_s10 = scalar_lea.hbm %s1831_s1, 32 }
  0x2f   : > { %s311_s21 = sshll.u32 %s310_s20, 4  ;;  %s312_s21 = int_to_ptr.hbm [resolvable:$true] %s311_s21 }
  0x30   : > { %s1308_s0 = sshra.s32 %s312_s21, 4  ;;  %s1309_s0 = int_to_ptr.hbm [resolvable:$true] %s1308_s0 }
  0x31   : > { %s1310_s2 = scalar_lea.hbm %s1309_s0, 16  ;;  %p1316_p0 = scmp.lt.s32.totalorder %s1309_s0, %s1831_s1 }
  0x32   : > { %p1311_p2 = scmp.ne.s32.totalorder %s1309_s0, %s1310_s2  ;;  %p1317_p5 = scmp.lt.s32.totalorder %s1315_s10, %s1310_s2 }
  0x34   : > { %p1313_p12 = pnand %p1312_p10, %p1311_p2  ;;  %p1318_p7 = por %p1317_p5, %p1316_p0 }
  0x36   : > { %p1314_p13 = pneg %p1313_p12 }
  0x38   : > { %p1319_p11 = pnand %p1318_p7, %p1314_p13 }
  0x3a   : > { %1322 = shalt.err (!%p1319_p11)
}
  0x3b   : > { %s1833_s13 = smov 8   ;;  %s1834_s18 = smov 128  }
  0x3c   : > { %1172 = dma.hbm_to_vmem [thread:$0]  (!%p1625_p9), %s312_s21, 256, %s314_s23, %s302_s24, %s1834_s18, %s1834_s18, %s1833_s13  }
  0x3d   : > { %325 = sbr.rel (%p1573_p8) target bundleno = 422 (0x1a6), region = 44 }
  0x42   : > { %1439 = dma.done.wait (%p72_p1), [#allocation5], 16  }
  0x43   : > { %1441 = vsyncadd (%p72_p1), [#allocation5], 4294967280  ;;  %s1649_s0 = sand.u32 1, %s1464_s28  }
  0x44   : > { %s1652_s2 = sshll.u32 %s1649_s0, 4  ;;  %s333_s22 = scalar_lea.sflag [#allocation3], %s1649_s0 }
  0x45   : > { %s336_s23 = scalar_lea.vmem [#allocation6], %s1652_s2 }
  0x46   : > { %1443 = dma.done.wait (%p1560_p4), %s333_s22, 256  }
  0x47   : > { %1445 = vsyncadd (%p1560_p4), %s333_s22, 4294967040 }
  0x48   : > { %1447 = dma.done.wait (%p72_p1), [#allocation8], 4096  }
  0x49   : > { %1449 = vsyncadd (%p72_p1), [#allocation8], 4294963200 }
  0x4a   : > { %352 = sfence }
  0x4b   : > { %v1020_v0 = vld [vmem:[#allocation7 + $0x70] sm:$0xf]  ;;  %v1119_v1 = vld [vmem:[#allocation7 + $0x74] sm:$0xf0]  ;;  %v1118_v2 = vld [vmem:[#allocation7 + $0x74] sm:$0xf] }
  0x4c   : > { %v1021_v3 = vor.u32 %v1119_v1, %v1020_v0  ;;  %v1022_v4 = vld [vmem:[#allocation7 + $0x78] sm:$0xf0]  ;;  %v1012_v5 = vld [vmem:[#allocation7 + $0x60] sm:$0xf]  ;;  %v1117_v6 = vld [vmem:[#allocation7 + $0x64] sm:$0xf0] }
  0x4d   : > { %v1025_v7 = vor.u32 %v1118_v2, %v1022_v4  ;;  %v1116_v8 = vld [vmem:[#allocation7 + $0x64] sm:$0xf]  ;;  %v1014_v9 = vld [vmem:[#allocation7 + $0x68] sm:$0xf0]  ;;  %v1013_v10 = vor.u32 %v1117_v6, %v1012_v5  ;;  %v1004_v12 = vld [vmem:[#allocation7 + $0x50] sm:$0xf] }
  0x4e   : > { %500 = vmatpush.bf16.msra.mxu0 %v1021_v3  ;;  %v1017_v11 = vor.u32 %v1116_v8, %v1014_v9  ;;  %v1115_v13 = vld [vmem:[#allocation7 + $0x54] sm:$0xf0]  ;;  %v1114_v14 = vld [vmem:[#allocation7 + $0x54] sm:$0xf]  ;;  %v1006_v15 = vld [vmem:[#allocation7 + $0x58] sm:$0xf0] }
  0x4f   : > { %514 = vmatpush.bf16.msra.mxu1 %v1025_v7  ;;  %v1005_v16 = vor.u32 %v1115_v13, %v1004_v12  ;;  %v1009_v17 = vor.u32 %v1114_v14, %v1006_v15  ;;  %v996_v18 = vld [vmem:[#allocation7 + $0x40] sm:$0xf]  ;;  %v1113_v19 = vld [vmem:[#allocation7 + $0x44] sm:$0xf0]  ;;  %v1112_v20 = vld [vmem:[#allocation7 + $0x44] sm:$0xf] }
  0x50   : > { %v998_v21 = vld [vmem:[#allocation7 + $0x48] sm:$0xf0]  ;;  %v997_v22 = vor.u32 %v1113_v19, %v996_v18  ;;  %v1127_v23 = vld [vmem:[#allocation9 + $0x38] sm:$0xff]  ;;  %v988_v26 = vld [vmem:[#allocation7 + $0x30] sm:$0xf]  ;;  %s1835_s3 = sld [smem:[#allocation22_spill]] }
  0x51   : > { %v1135_v24 = vld [vmem:[#allocation9 + $0x78] sm:$0xff]  ;;  %v1001_v25 = vor.u32 %v1112_v20, %v998_v21  ;;  %v1110_v28 = vld [vmem:[#allocation7 + $0x34] sm:$0xf]  ;;  %666 = vmatpush.bf16.msra.mxu2 %v1127_v23  ;;  %v980_v34 = vld [vmem:[#allocation7 + $0x20] sm:$0xf]  ;;  %s1677_s24 = sld [smem:[#allocation2]] }
  0x52   : > { %501 = vmatpush.bf16.msra.mxu0 %v1013_v10  ;;  %v1111_v27 = vld [vmem:[#allocation7 + $0x34] sm:$0xf0]  ;;  %v990_v29 = vld [vmem:[#allocation7 + $0x38] sm:$0xf0]  ;;  %680 = vmatpush.bf16.msra.mxu3 %v1135_v24  ;;  %v1126_v30 = vld [vmem:[#allocation9 + $0x30] sm:$0xff]  ;;  %s1679_s21 = sld [smem:[#allocation2 + $0x2]] }
  0x53   : > { %515 = vmatpush.bf16.msra.mxu1 %v1017_v11  ;;  %v1134_v31 = vld [vmem:[#allocation9 + $0x70] sm:$0xff]  ;;  %v989_v32 = vor.u32 %v1111_v27, %v988_v26  ;;  %v993_v33 = vor.u32 %v1110_v28, %v990_v29  ;;  %v1109_v35 = vld [vmem:[#allocation7 + $0x24] sm:$0xf0]  ;;  %v1108_v36 = vld [vmem:[#allocation7 + $0x24] sm:$0xf]  ;;  %s1836_s5 = sld [smem:[#allocation24_spill]] }
  0x54   : > { %v982_v37 = vld [vmem:[#allocation7 + $0x28] sm:$0xf0]  ;;  %v981_v40 = vor.u32 %v1109_v35, %v980_v34  ;;  %v972_v42 = vld [vmem:[#allocation7 + $0x10] sm:$0xf]  ;;  %v1107_v43 = vld [vmem:[#allocation7 + $0x14] sm:$0xf0] }
  0x55   : > { %667 = vmatpush.bf16.msra.mxu2 %v1126_v30  ;;  %v1125_v38 = vld [vmem:[#allocation9 + $0x28] sm:$0xff]  ;;  %v985_v41 = vor.u32 %v1108_v36, %v982_v37  ;;  %v1106_v44 = vld [vmem:[#allocation7 + $0x14] sm:$0xf]  ;;  %v974_v45 = vld [vmem:[#allocation7 + $0x18] sm:$0xf0]  ;;  %v973_v48 = vor.u32 %v1107_v43, %v972_v42  ;;  %s1684_s10 = sld [smem:[#allocation2 + $0x1]] }
  0x56   : > { %502 = vmatpush.bf16.msra.mxu0 %v1005_v16  ;;  %681 = vmatpush.bf16.msra.mxu3 %v1134_v31  ;;  %v1133_v39 = vld [vmem:[#allocation9 + $0x68] sm:$0xff]  ;;  %v1124_v46 = vld [vmem:[#allocation9 + $0x20] sm:$0xff]  ;;  %v977_v49 = vor.u32 %v1106_v44, %v974_v45  ;;  %v1123_v59 = vld [vmem:[#allocation9 + $0x18] sm:$0xff]  ;;  %s1688_s14 = sshll.u32 %s1549_s9, 4  ;;  %s376_s20 = scalar_lea.vmem [#allocation10], %s1652_s2 }
  0x57   : > { %516 = vmatpush.bf16.msra.mxu1 %v1009_v17  ;;  %v1132_v47 = vld [vmem:[#allocation9 + $0x60] sm:$0xff]  ;;  %v1105_v51 = vld [vmem:[#allocation7 + $0x4] sm:$0xf0]  ;;  %v966_v53 = vld [vmem:[#allocation7 + $0x8] sm:$0xf0]  ;;  %v699_v24 = vstv %s1677_s24  ;;  %s740_s22 = scalar_lea.hbm %s1811_s6, %s1688_s14  ;;  %s1701_s16 = scalar_lea.vmem [#allocation13], %s1652_s2 }
  0x58   : > { %v964_v50 = vld [vmem:[#allocation7] sm:$0xf]  ;;  %v1104_v52 = vld [vmem:[#allocation7 + $0x4] sm:$0xf]  ;;  %v1670_v56 = vld [vmem:[%s336_s23 + $0x8] sm:$0xff]  ;;  %v713_v26 = vstv %s1679_s21  ;;  %s1698_s11 = sshll.u32 %s740_s22, 4  ;;  %s757_s17 = scalar_lea.hbm %s1812_s7, %s1688_s14  ;;  %s744_s11 = int_to_ptr.hbm [resolvable:$true] %s1698_s11 }
  0x59   : > { %668 = vmatpush.bf16.msra.mxu2 %v1125_v38  ;;  %v965_v54 = vor.u32 %v1105_v51, %v964_v50  ;;  %v1666_v55 = vld [vmem:[%s336_s23] sm:$0xff]  ;;  %v969_v57 = vor.u32 %v1104_v52, %v966_v53  ;;  %v1131_v60 = vld [vmem:[#allocation9 + $0x58] sm:$0xff]  ;;  %v1121_v63 = vld [vmem:[#allocation9 + $0x8] sm:$0xff]  ;;  %s741_s23 = sshll.u32 %s376_s20, 4  ;;  %s1711_s19 = scalar_lea.vmem [#allocation11], %s1652_s2  ;;  %s1704_s23 = int_to_ptr.vmem [resolvable:$true] %s741_s23 }
  0x5a   : > { %503 = vmatpush.bf16.msra.mxu0 %v997_v22  ;;  %682 = vmatpush.bf16.msra.mxu3 %v1133_v39  ;;  %v397_v58 = vpack.c.bf16 %v1670_v56, %v1666_v55  ;;  %v1122_v61 = vld [vmem:[#allocation9 + $0x10] sm:$0xff]  ;;  %v1129_v0 = vld [vmem:[#allocation9 + $0x48] sm:$0xff]  ;;  %v1120_v1 = vld [vmem:[#allocation9] sm:$0xff]  ;;  %s774_s22 = scalar_lea.hbm %s1813_s8, %s1688_s14  ;;  %s758_s1 = sshll.u32 %s1711_s19, 4  ;;  %s759_s1 = int_to_ptr.vmem [resolvable:$true] %s758_s1 }
  0x5b   : > { %517 = vmatpush.bf16.msra.mxu1 %v1001_v25  ;;  %v1130_v62 = vld [vmem:[#allocation9 + $0x50] sm:$0xff]  ;;  %v1128_v2 = vld [vmem:[#allocation9 + $0x40] sm:$0xff]  ;;  %v705_v29 = vstv %s1684_s10  ;;  %s1721_s24 = sshll.u32 %s757_s17, 4  ;;  %s719_s21 = scalar_lea.sflag [#allocation4], %s1649_s0  ;;  %s761_s24 = int_to_ptr.hbm [resolvable:$true] %s1721_s24 }
  0x5c   : > { %v414_v3 = vld [vmem:[%s1835_s3] sm:$0x3]  ;;  %s1352_s2 = sshra.s32 %s744_s11, 4  ;;  %s1353_s2 = int_to_ptr.hbm [resolvable:$true] %s1352_s2 }
  0x5d   : > { %669 = vmatpush.bf16.msra.mxu2 %v1124_v46  ;;  %v416_v6 = vperm.slane %v414_v3, 0  ;;  %v417_v7 = vperm.slane %v414_v3, 1  ;;  %v1232_v20 = vld [vmem:[%s1836_s5] ss:$0 sm:$0xff]  ;;  %s1354_s3 = scalar_lea.hbm %s1353_s2, 16  ;;  %s1358_s5 = scalar_lea.hbm %s1811_s6, 32 }
  0x5e   : > { %504 = vmatpush.bf16.msra.mxu0 %v989_v32  ;;  %683 = vmatpush.bf16.msra.mxu3 %v1132_v47  ;;  %p1355_p1 = scmp.ne.s32.totalorder %s1353_s2, %s1354_s3  ;;  %p1359_p11 = scmp.lt.s32.totalorder %s1353_s2, %s1811_s6 }
  0x5f   : > { %518 = vmatpush.bf16.msra.mxu1 %v993_v33  ;;  %p1360_p9 = scmp.lt.s32.totalorder %s1358_s5, %s1354_s3 }
  0x60   : > { %p1356_p4 = pnand %p1355_p1, %p1615_p3 }
  0x61   : > { %670 = vmatpush.bf16.msra.mxu2 %v1123_v59  ;;  %p1361_p2 = por %p1360_p9, %p1359_p11 }
  0x62   : > { %505 = vmatpush.bf16.msra.mxu0 %v981_v40  ;;  %684 = vmatpush.bf16.msra.mxu3 %v1131_v60  ;;  %p1357_p8 = pneg %p1356_p4 }
  0x63   : > { %519 = vmatpush.bf16.msra.mxu1 %v985_v41 }
  0x64   : > { %p1362_p10 = pnand %p1361_p2, %p1357_p8 }
  0x65   : > { %671 = vmatpush.bf16.msra.mxu2 %v1122_v61 }
  0x66   : > { %506 = vmatpush.bf16.msra.mxu0 %v973_v48  ;;  %685 = vmatpush.bf16.msra.mxu3 %v1130_v62 }
  0x67   : > { %520 = vmatpush.bf16.msra.mxu1 %v977_v49 }
  0x69   : > { %672 = vmatpush.bf16.msra.mxu2 %v1121_v63 }
  0x6a   : > { %507 = vmatpush.bf16.msra.mxu0 %v965_v54  ;;  %686 = vmatpush.bf16.msra.mxu3 %v1129_v0 }
  0x6b   : > { %521 = vmatpush.bf16.msra.mxu1 %v969_v57 }
  0x6d   : > { %508 = vmatmul.bf16.vlgmr.msra.gmra.mxu0 %v397_v58  ;;  %673 = vmatpush.bf16.msra.mxu2 %v1120_v1 }
  0x6e   : > { %522 = vmatmul.bf16.vlgmr.msra.gmra.mxu1 %v397_v58  ;;  %687 = vmatpush.bf16.msra.mxu3 %v1128_v2 }
  0xea   : > { %v509_v4 = vpop.f32.mrf.mxu0 }
  0xeb   : > { %v523_v5 = vpop.f32.mrf.mxu1  ;;  %v510_v8 = vadd.f32 %v509_v4, %v416_v6 }
  0xec   : > { %v524_v9 = vadd.f32 %v523_v5, %v417_v7 }
  0xed   : > { %v528_v14 = vmax.f32 %v510_v8, 0.0 }
  0xee   : > { %v529_v16 = vmax.f32 %v524_v9, 0.0 }
  0xf2   : > { %v511_v10 = vpop.f32.mrf.mxu0 }
  0xf3   : > { %v512_v11 = vadd.f32 %v511_v10, %v416_v6  ;;  %v525_v12 = vpop.f32.mrf.mxu1 }
  0xf4   : > { %v526_v13 = vadd.f32 %v525_v12, %v417_v7 }
  0xf5   : > { %v530_v15 = vmax.f32 %v512_v11, 0.0 }
  0xf6   : > { %v531_v17 = vmax.f32 %v526_v13, 0.0 }
  0xf7   : > { %v532_v18 = vpack.c.bf16 %v530_v15, %v528_v14 }
  0xf8   : > { %v533_v19 = vpack.c.bf16 %v531_v17, %v529_v16 }
  0xf9   : > { %674 = vmatmul.bf16.vlgmr.msra.gmra.mxu2 %v532_v18 }
  0xfa   : > { %688 = vmatmul.bf16.vlgmr.msra.gmra.mxu3 %v533_v19 }
 0x17c   : > { %v675_v21 = vpop.f32.mrf.mxu2 }
 0x17d   : > { %v676_v22 = vadd.f32 %v1232_v20, %v675_v21  ;;  %v689_v23 = vpop.f32.mrf.mxu3 }
 0x17f   : > { %v690_v25 = vadd.f32 %v689_v23, %v676_v22 }
 0x181   : > { %694 = vst [vmem:[%s376_s20] sm:$0xff] %v690_v25  ;;  %v700_v27 = vmul.f32 %v699_v24, %v690_v25  ;;  %v710_v28 = vsub.f32 0.0, %v690_v25 }
 0x183   : > { %v702_v30 = vsub.f32 %v1666_v55, %v700_v27  ;;  %v714_v31 = vmul.f32 %v713_v26, %v710_v28 }
 0x184   : > { %v677_v32 = vpop.f32.mrf.mxu2 }
 0x185   : > { %v706_v33 = vmul.f32 %v705_v29, %v702_v30  ;;  %716 = vst [vmem:[%s1701_s16] sm:$0xff] %v714_v31  ;;  %v678_v34 = vadd.f32 %v1232_v20, %v677_v32  ;;  %v691_v35 = vpop.f32.mrf.mxu3 }
 0x187   : > { %708 = vst [vmem:[%s1711_s19] sm:$0xff] %v706_v33  ;;  %v692_v36 = vadd.f32 %v691_v35, %v678_v34 }
 0x189   : > { %695 = vst [vmem:[%s376_s20 + $0x8] sm:$0xff] %v692_v36  ;;  %v701_v37 = vmul.f32 %v699_v24, %v692_v36  ;;  %v711_v38 = vsub.f32 0.0, %v692_v36 }
 0x18a   : > { %1365 = shalt.err (!%p1362_p10)
}
 0x18b   : > { %s1481_s0 = smov 128   ;;  %s1482_s20 = smov 8   ;;  %v703_v39 = vsub.f32 %v1670_v56, %v701_v37  ;;  %v715_v40 = vmul.f32 %v713_v26, %v711_v38 }
 0x18c   : > { %1153 = dma.vmem_to_hbm [thread:$0]  (%p1615_p3), %s1704_s23, 256, %s744_s11, %s719_s21, %s1481_s0, %s1481_s0, %s1482_s20  }
 0x18d   : > { %s775_s4 = sshll.u32 %s1701_s16, 4  ;;  %s1740_s3 = sshll.u32 %s774_s22, 4  ;;  %v707_v41 = vmul.f32 %v705_v29, %v703_v39  ;;  %717 = vst [vmem:[%s1701_s16 + $0x8] sm:$0xff] %v715_v40  ;;  %s1744_s4 = int_to_ptr.vmem [resolvable:$true] %s775_s4  ;;  %s778_s3 = int_to_ptr.hbm [resolvable:$true] %s1740_s3 }
 0x18e   : > { %s1837_s5 = sand.u32 1, %s1549_s9   ;;  %s1380_s23 = sshra.s32 %s761_s24, 4  ;;  %s1381_s23 = int_to_ptr.hbm [resolvable:$true] %s1380_s23 }
 0x18f   : > { %709 = vst [vmem:[%s1711_s19 + $0x8] sm:$0xff] %v707_v41  ;;  %s1750_s17 = scalar_lea.sflag [#allocation12], %s1837_s5  ;;  %s1382_s11 = scalar_lea.hbm %s1381_s23, 16 }
 0x190   : > { %p1383_p12 = scmp.ne.s32.totalorder %s1381_s23, %s1382_s11  ;;  %s1386_s16 = scalar_lea.hbm %s1812_s7, 32 }
 0x191   : > { %p1387_p5 = scmp.lt.s32.totalorder %s1381_s23, %s1812_s7  ;;  %p1388_p7 = scmp.lt.s32.totalorder %s1386_s16, %s1382_s11 }
 0x192   : > { %p1384_p13 = pnand %p1383_p12, %p1615_p3 }
 0x193   : > { %p1389_p1 = por %p1388_p7, %p1387_p5 }
 0x194   : > { %p1385_p0 = pneg %p1384_p13 }
 0x196   : > { %p1390_p4 = pnand %p1389_p1, %p1385_p0 }
 0x198   : > { %1393 = shalt.err (!%p1390_p4)
}
 0x199   : > { %1154 = dma.vmem_to_hbm [thread:$0]  (%p1615_p3), %s759_s1, 256, %s761_s24, %s1750_s17, %s1481_s0, %s1481_s0, %s1482_s20  }
 0x19a   : > { %s1408_s9 = sshra.s32 %s778_s3, 4  ;;  %s1414_s14 = scalar_lea.hbm %s1813_s8, 32  ;;  %s1409_s9 = int_to_ptr.hbm [resolvable:$true] %s1408_s9 }
 0x19b   : > { %s1410_s19 = scalar_lea.hbm %s1409_s9, 16  ;;  %p1415_p2 = scmp.lt.s32.totalorder %s1409_s9, %s1813_s8 }
 0x19c   : > { %p1411_p8 = scmp.ne.s32.totalorder %s1409_s9, %s1410_s19  ;;  %p1416_p10 = scmp.lt.s32.totalorder %s1414_s14, %s1410_s19 }
 0x19e   : > { %p1412_p11 = pnand %p1411_p8, %p1615_p3  ;;  %p1417_p12 = por %p1416_p10, %p1415_p2 }
 0x1a0   : > { %p1413_p9 = pneg %p1412_p11 }
 0x1a2   : > { %p1418_p13 = pnand %p1417_p12, %p1413_p9 }
 0x1a4   : > { %1421 = shalt.err (!%p1418_p13)
}
 0x1a5   : > { %1155 = dma.vmem_to_hbm [thread:$0]  (%p1615_p3), %s1744_s4, 256, %s778_s3, %s1750_s17, %s1481_s0, %s1481_s0, %s1482_s20  }
 0x1a6 PF: > { %s792_s1 = sand.u32 1, %s1460_s27   ;;  %p1838_p0 = scmp.ge.s32.totalorder %s1472_s30, 2 }
 0x1a7   : > { %s793_s24 = scalar_lea.sflag [#allocation4], %s792_s1 }
 0x1a8   : > { %p1174_p5 = pnand %p1838_p0, %p1565_p6 }
 0x1aa   : > { %p1175_p7 = pneg %p1174_p5 }
 0x1ac   : > { %1451 = dma.done.wait (%p1175_p7), %s793_s24, 256  }
 0x1ad   : > { %1453 = vsyncadd (%p1175_p7), %s793_s24, 4294967040  ;;  %s1839_s26 = sadd.s32 4294967294, %s1472_s30  }
 0x1ae   : > { %s802_s11 = sand.u32 1, %s1839_s26  }
 0x1af   : > { %s803_s10 = scalar_lea.sflag [#allocation12], %s802_s11 }
 0x1b0   : > { %1455 = dma.done.wait (%p1175_p7), %s803_s10, 512  }
 0x1b1   : > { %1457 = vsyncadd (%p1175_p7), %s803_s10, 4294966784  ;;  %p27_p3 = scmp.ge.s32.totalorder %s1602_s15, 4   ;;  %s1840_s27 = smov %s1464_s28 }
 0x1b2   : > { %s1841_s28 = smov %s1468_s29  ;;  %s1842_s29 = smov %s1611_s25 }
 0x1b3   : > { %s1843_s30 = smov %s1602_s15  ;;  %29 = sbr.rel (!%p27_p3) target bundleno = 16 (0x10), region = 134 }
 0x1b8   :  { %819 = vsyncpa [#allocation3], 1 }
 0x1b9   :  { %821 = vsyncpa [#allocation3 + $0x1], 1 }
 0x1ba   :  { %822 = vsyncpa [#allocation8], 1 }
 0x1bb   :  { %823 = vsyncpa [#allocation4], 1 }
 0x1bc   :  { %825 = vsyncpa [#allocation4 + $0x1], 1 }
 0x1bd   :  { %826 = vsyncpa [#allocation12], 1 }
 0x1be   :  { %828 = vsyncpa [#allocation12 + $0x1], 1 }
 0x1bf   :  { %829 = vsyncpa [#allocation5], 1 }
 0x1c0   :  { %831 = vsyncpa [#allocation5 + $0x1], 1 }

</bundles_post_ra>
